<compile_context>
chip_gen: v7x
topology: tpu7x:2x2x1
jax: 0.10.0
libtpu: 0.0.40
codegen_flags: <defaults>
</compile_context>

<pallas_src>
import jax
import jax.numpy as jnp
from jax.experimental import pallas as pl
from jax.experimental.pallas import tpu as pltpu

_LANE = 128
_SUBLANE = 8
_MAX_TILE_ROWS = 4096  # sized for v7x (64 MiB VMEM) with double buffering


def _round_up(x, m):
    return (x + m - 1) // m * m


# ----------------------------------------------------------------------------
# Kernel: fused 3-layer MLP (Linear -> Tanh -> Linear -> Tanh -> Linear)
#   x: (TILE_ROWS, n_act)   w_i: (Din_i, Dout_i) bf16   b_i: (1, Dout_i) f32
#   o: (TILE_ROWS, d_out_padded)
# ----------------------------------------------------------------------------
def mlp3_tanh_kernel(x_ref, w1_ref, b1_ref, w2_ref, b2_ref, w3_ref, b3_ref, o_ref):
    # Cast to bf16 inside the kernel (VPU slot has slack); accumulate in f32.
    x = x_ref[...].astype(w1_ref.dtype)
    h = jnp.tanh(
        jnp.dot(x, w1_ref[...], preferred_element_type=jnp.float32) + b1_ref[...]
    )
    h = jnp.tanh(
        jnp.dot(h.astype(w2_ref.dtype), w2_ref[...],
                preferred_element_type=jnp.float32) + b2_ref[...]
    )
    # Final Linear has no activation (matches the PyTorch Sequential).
    o = (
        jnp.dot(h.astype(w3_ref.dtype), w3_ref[...],
                preferred_element_type=jnp.float32) + b3_ref[...]
    )
    o_ref[...] = o.astype(o_ref.dtype)


# ----------------------------------------------------------------------------
# Param prep: bf16 weights (MXU operands), f32 biases, lane-dense final layer.
# ----------------------------------------------------------------------------
def pack_params(params):
    w1, b1, w2, b2, w3, b3 = params
    d_out = w3.shape[-1]
    d_out_p = max(_LANE, _round_up(d_out, _LANE))
    if d_out_p != d_out:
        w3 = jnp.pad(w3, ((0, 0), (0, d_out_p - d_out)))
        b3 = jnp.pad(b3, ((0, 0), (0, d_out_p - d_out)))
    packed = (
        w1.astype(jnp.bfloat16), b1.astype(jnp.float32),
        w2.astype(jnp.bfloat16), b2.astype(jnp.float32),
        w3.astype(jnp.bfloat16), b3.astype(jnp.float32),
    )
    return packed, d_out


# ----------------------------------------------------------------------------
# Forward wrapper (mirror of ProfilesFromActuators.forward)
# ----------------------------------------------------------------------------
def profiles_from_actuators_forward(packed, profiles_tensor, actuators_tensor,
                                    *, out_dtype=jnp.float32):
    """profiles_tensor is unused (kept for signature parity with the module)."""
    del profiles_tensor  # unused in the reference forward
    (w1, b1, w2, b2, w3, b3), d_out = packed

    lead_shape = actuators_tensor.shape[:-1]
    n_act = actuators_tensor.shape[-1]
    hidden = w1.shape[-1]
    d_out_p = w3.shape[-1]

    # Free, contiguous reshape (no transpose, no wrapper-side cast).
    x = actuators_tensor.reshape(-1, n_act)
    n_rows = x.shape[0]

    tile_rows = min(_MAX_TILE_ROWS, _round_up(n_rows, _SUBLANE))
    grid = (pl.cdiv(n_rows, tile_rows),)

    def resident(shape):
        # Weights/biases: same block for every grid step -> stay VMEM-resident.
        return pl.BlockSpec(shape, lambda i: (0, 0))

    out = pl.pallas_call(
        mlp3_tanh_kernel,
        out_shape=jax.ShapeDtypeStruct((n_rows, d_out_p), out_dtype),
        grid=grid,
        in_specs=[
            pl.BlockSpec((tile_rows, n_act), lambda i: (i, 0)),
            resident((n_act, hidden)),
            resident((1, hidden)),
            resident((hidden, hidden)),
            resident((1, hidden)),
            resident((hidden, d_out_p)),
            resident((1, d_out_p)),
        ],
        out_specs=pl.BlockSpec((tile_rows, d_out_p), lambda i: (i, 0)),
        compiler_params=pltpu.CompilerParams(
            dimension_semantics=("parallel",)),
    )(x, w1, b1, w2, b2, w3, b3)

    if d_out_p != d_out:
        out = out[:, :d_out]
    return out.reshape(*lead_shape, d_out)


# ----------------------------------------------------------------------------
# Deterministic synthetic parameters (shapes from the module __init__)
# ----------------------------------------------------------------------------
def init_params(n_act, n_prof, n_profile_points, hidden_size=30, seed=42):
    keys = iter(jax.random.split(jax.random.PRNGKey(seed), 16))

    def rnd(shape, scale=0.1):
        return (scale * jax.random.normal(next(keys), shape)).astype(jnp.float32)

    d_out = n_prof * n_profile_points
    # Stored as (in, out) so the kernel does x @ W directly (== torch x @ W.T).
    return [
        rnd((n_act, hidden_size)), rnd((1, hidden_size)),
        rnd((hidden_size, hidden_size)), rnd((1, hidden_size)),
        rnd((hidden_size, d_out)), rnd((1, d_out)),
    ]


# Pure-JAX f32 reference for a correctness sanity check.
def _reference(params, actuators_tensor):
    w1, b1, w2, b2, w3, b3 = params
    x = actuators_tensor.astype(jnp.float32)
    h = jnp.tanh(x @ w1 + b1)
    h = jnp.tanh(h @ w2 + b2)
    return h @ w3 + b3


# ----------------------------------------------------------------------------
if __name__ == "__main__":
    # Small shapes consistent with the module:
    #   n_act actuators, n_prof profiles x nProfilePoints points, hidden=30.
    #   n_prof * nProfilePoints = 4 * 32 = 128 -> lane-dense output stores.
    B, T = 2, 8
    n_act, n_prof, n_pts, hidden = 5, 4, 32, 30

    k1, k2 = jax.random.split(jax.random.PRNGKey(0), 2)
    profiles_tensor = jax.random.normal(k1, (B, n_prof, n_pts), jnp.float32)
    actuators_tensor = jax.random.normal(k2, (B, T, n_act), jnp.float32)

    params = init_params(n_act, n_prof, n_pts, hidden_size=hidden)
    packed = pack_params(params)

    out = profiles_from_actuators_forward(packed, profiles_tensor, actuators_tensor)
    out = jax.block_until_ready(out)

    assert out.shape == (B, T, n_prof * n_pts), out.shape
    assert bool(jnp.all(jnp.isfinite(out)))

    # bf16 matmul operands (f32 accumulation) vs. f32 reference: loose tolerance.
    ref = _reference(params, actuators_tensor)
    assert bool(jnp.allclose(out, ref, atol=2e-2, rtol=2e-2)), float(
        jnp.max(jnp.abs(out - ref)))

    print("KERNEL_OK")
</pallas_src>

<mosaic_0001>
module attributes {stable_mosaic.version = 11 : i64} {
  func.func @mlp3_tanh_kernel(%arg0: i32, %arg1: memref<16x5xf32, #tpu.memory_space<vmem>>, %arg2: memref<5x30xbf16, #tpu.memory_space<vmem>>, %arg3: memref<1x30xf32, #tpu.memory_space<vmem>>, %arg4: memref<30x30xbf16, #tpu.memory_space<vmem>>, %arg5: memref<1x30xf32, #tpu.memory_space<vmem>>, %arg6: memref<30x128xbf16, #tpu.memory_space<vmem>>, %arg7: memref<1x128xf32, #tpu.memory_space<vmem>>, %arg8: memref<16x128xf32, #tpu.memory_space<vmem>>) attributes {dimension_semantics = [#tpu.dimension_semantics<parallel>], iteration_bounds = array<i64: 1>, scalar_prefetch = 0 : i64, scratch_operands = 0 : i64, tpu.core_type = #tpu.core_type<tc>, window_params = [{transform_indices = @transform_0, window_bounds = array<i64: 16, 5>}, {pipeline_mode = #tpu.pipeline_mode<synchronous>, transform_indices = @transform_1, window_bounds = array<i64: 5, 30>}, {pipeline_mode = #tpu.pipeline_mode<synchronous>, transform_indices = @transform_2, window_bounds = array<i64: 1, 30>}, {pipeline_mode = #tpu.pipeline_mode<synchronous>, transform_indices = @transform_3, window_bounds = array<i64: 30, 30>}, {pipeline_mode = #tpu.pipeline_mode<synchronous>, transform_indices = @transform_4, window_bounds = array<i64: 1, 30>}, {pipeline_mode = #tpu.pipeline_mode<synchronous>, transform_indices = @transform_5, window_bounds = array<i64: 30, 128>}, {pipeline_mode = #tpu.pipeline_mode<synchronous>, transform_indices = @transform_6, window_bounds = array<i64: 1, 128>}, {transform_indices = @transform_7, window_bounds = array<i64: 16, 128>}]} {
    %c0 = arith.constant 0 : index
    %c0_0 = arith.constant 0 : index
    %0 = vector.load %arg1[%c0, %c0_0] : memref<16x5xf32, #tpu.memory_space<vmem>>, vector<16x5xf32>
    %1 = arith.truncf %0 : vector<16x5xf32> to vector<16x5xbf16>
    %c0_1 = arith.constant 0 : index
    %c0_2 = arith.constant 0 : index
    %2 = vector.load %arg2[%c0_1, %c0_2] : memref<5x30xbf16, #tpu.memory_space<vmem>>, vector<5x30xbf16>
    %cst = arith.constant dense<0.000000e+00> : vector<16x30xf32>
    %3 = tpu.matmul %1, %2, %cst {dimension_numbers = #tpu.dot_dimension_numbers<[1], [0], [0], [1], [0, 0, 1, 1], [], []>} : vector<16x5xbf16>, vector<5x30xbf16>, vector<16x30xf32> -> vector<16x30xf32>
    %c0_3 = arith.constant 0 : index
    %c0_4 = arith.constant 0 : index
    %4 = vector.load %arg3[%c0_3, %c0_4] : memref<1x30xf32, #tpu.memory_space<vmem>>, vector<1x30xf32>
    %5 = vector.broadcast %4 : vector<1x30xf32> to vector<16x30xf32>
    %6 = arith.addf %3, %5 : vector<16x30xf32>
    %7 = math.tanh %6 : vector<16x30xf32>
    %8 = arith.truncf %7 : vector<16x30xf32> to vector<16x30xbf16>
    %c0_5 = arith.constant 0 : index
    %c0_6 = arith.constant 0 : index
    %9 = vector.load %arg4[%c0_5, %c0_6] : memref<30x30xbf16, #tpu.memory_space<vmem>>, vector<30x30xbf16>
    %cst_7 = arith.constant dense<0.000000e+00> : vector<16x30xf32>
    %10 = tpu.matmul %8, %9, %cst_7 {dimension_numbers = #tpu.dot_dimension_numbers<[1], [0], [0], [1], [0, 0, 1, 1], [], []>} : vector<16x30xbf16>, vector<30x30xbf16>, vector<16x30xf32> -> vector<16x30xf32>
    %c0_8 = arith.constant 0 : index
    %c0_9 = arith.constant 0 : index
    %11 = vector.load %arg5[%c0_8, %c0_9] : memref<1x30xf32, #tpu.memory_space<vmem>>, vector<1x30xf32>
    %12 = vector.broadcast %11 : vector<1x30xf32> to vector<16x30xf32>
    %13 = arith.addf %10, %12 : vector<16x30xf32>
    %14 = math.tanh %13 : vector<16x30xf32>
    %15 = arith.truncf %14 : vector<16x30xf32> to vector<16x30xbf16>
    %c0_10 = arith.constant 0 : index
    %c0_11 = arith.constant 0 : index
    %16 = vector.load %arg6[%c0_10, %c0_11] : memref<30x128xbf16, #tpu.memory_space<vmem>>, vector<30x128xbf16>
    %cst_12 = arith.constant dense<0.000000e+00> : vector<16x128xf32>
    %17 = tpu.matmul %15, %16, %cst_12 {dimension_numbers = #tpu.dot_dimension_numbers<[1], [0], [0], [1], [0, 0, 1, 1], [], []>} : vector<16x30xbf16>, vector<30x128xbf16>, vector<16x128xf32> -> vector<16x128xf32>
    %c0_13 = arith.constant 0 : index
    %c0_14 = arith.constant 0 : index
    %18 = vector.load %arg7[%c0_13, %c0_14] : memref<1x128xf32, #tpu.memory_space<vmem>>, vector<1x128xf32>
    %19 = vector.broadcast %18 : vector<1x128xf32> to vector<16x128xf32>
    %20 = arith.addf %17, %19 : vector<16x128xf32>
    %c0_15 = arith.constant 0 : index
    %c0_16 = arith.constant 0 : index
    %21 = vector.load %arg8[%c0_15, %c0_16] : memref<16x128xf32, #tpu.memory_space<vmem>>, vector<16x128xf32>
    tpu.vector_store %arg8[%c0_15, %c0_16], %20 {strides = array<i32>} : memref<16x128xf32, #tpu.memory_space<vmem>>, vector<16x128xf32>,
    return
  }
  func.func @transform_0(%arg0: i32) -> (i32, i32) {
    %c0_i32 = arith.constant 0 : i32
    %c0_i32_0 = arith.constant 0 : i32
    return %arg0, %c0_i32 : i32, i32
  }
  func.func @transform_1(%arg0: i32) -> (i32, i32) {
    %c0_i32 = arith.constant 0 : i32
    %c0_i32_0 = arith.constant 0 : i32
    %c0_i32_1 = arith.constant 0 : i32
    return %c0_i32, %c0_i32_0 : i32, i32
  }
  func.func @transform_2(%arg0: i32) -> (i32, i32) {
    %c0_i32 = arith.constant 0 : i32
    %c0_i32_0 = arith.constant 0 : i32
    %c0_i32_1 = arith.constant 0 : i32
    return %c0_i32, %c0_i32_0 : i32, i32
  }
  func.func @transform_3(%arg0: i32) -> (i32, i32) {
    %c0_i32 = arith.constant 0 : i32
    %c0_i32_0 = arith.constant 0 : i32
    %c0_i32_1 = arith.constant 0 : i32
    return %c0_i32, %c0_i32_0 : i32, i32
  }
  func.func @transform_4(%arg0: i32) -> (i32, i32) {
    %c0_i32 = arith.constant 0 : i32
    %c0_i32_0 = arith.constant 0 : i32
    %c0_i32_1 = arith.constant 0 : i32
    return %c0_i32, %c0_i32_0 : i32, i32
  }
  func.func @transform_5(%arg0: i32) -> (i32, i32) {
    %c0_i32 = arith.constant 0 : i32
    %c0_i32_0 = arith.constant 0 : i32
    %c0_i32_1 = arith.constant 0 : i32
    return %c0_i32, %c0_i32_0 : i32, i32
  }
  func.func @transform_6(%arg0: i32) -> (i32, i32) {
    %c0_i32 = arith.constant 0 : i32
    %c0_i32_0 = arith.constant 0 : i32
    %c0_i32_1 = arith.constant 0 : i32
    return %c0_i32, %c0_i32_0 : i32, i32
  }
  func.func @transform_7(%arg0: i32) -> (i32, i32) {
    %c0_i32 = arith.constant 0 : i32
    %c0_i32_0 = arith.constant 0 : i32
    return %arg0, %c0_i32 : i32, i32
  }
}

</mosaic_0001>

<bundles_post_ra>
// kernel: tpu_custom_call.1
= control target key start
LH: loop header
LB: loop body
LE: loop exit
PB: predicated region body
PF: predicated region fallthrough
CT: control target
= control target key end

     0   :  { %12 = vsyncpa [#allocation3], 0  ;;  %s477_s0 = inlined_call_operand.vmem [shape: f32[16,5], index: 0, kind: input, shape index: {}]   ;;  %s478_s1 = inlined_call_operand.hbm [shape: bf16[5,30], index: 1, kind: input, shape index: {}]   ;;  %s479_s2 = inlined_call_operand.vmem [shape: f32[1,30], index: 2, kind: input, shape index: {}]   ;;  %s480_s3 = inlined_call_operand.vmem [shape: bf16[30,30], index: 3, kind: input, shape index: {}]   ;;  %s481_s4 = inlined_call_operand.vmem [shape: f32[1,30], index: 4, kind: input, shape index: {}]   ;;  %s482_s5 = inlined_call_operand.vmem [shape: bf16[30,128], index: 5, kind: input, shape index: {}]   ;;  %s483_s6 = inlined_call_operand.vmem [shape: f32[1,128], index: 6, kind: input, shape index: {}]   ;;  %s484_s7 = inlined_call_operand.hbm [shape: f32[16,128], index: 7, kind: output, shape index: {}]  }
   0x1   :  { %13 = vsyncpa [#allocation4], 0  ;;  %s375_s24 = smov [#allocation2]   ;;  %s327_s28 = scalar_lea.hbm %s478_s1, 64 }
   0x2   :  { %s22_s25 = sshll.u32 %s375_s24, 4  ;;  %p328_p0 = scmp.ne.s32.totalorder %s478_s1, %s327_s28  ;;  %s23_s25 = int_to_ptr.vmem [resolvable:$true] %s22_s25 }
   0x3   :  { %p331_p1 = scmp.lt.u32.totalorder %s327_s28, %s478_s1 }
   0x5   :  { %p333_p2 = pnand %p331_p1, %p328_p0 }
   0x7   :  { %336 = shalt.err (!%p333_p2)
}
   0x8   :  { %s337_s10 = scalar_lea.vmem %s23_s25, 64  ;;  %p342_p4 = scmp.lt.s32.totalorder %s23_s25, %s23_s25 }
   0x9   :  { %p338_p3 = scmp.ne.s32.totalorder %s23_s25, %s337_s10  ;;  %p343_p5 = scmp.lt.s32.totalorder %s337_s10, %s337_s10 }
   0xb   :  { %p344_p6 = por %p343_p5, %p342_p4 }
   0xd   :  { %p345_p7 = pnand %p344_p6, %p338_p3 }
   0xf   :  { %348 = shalt.err (!%p345_p7)
}
  0x10   :  { %25 = dma.hbm_to_vmem [thread:$0]  %s478_s1, 64, %s23_s25, [#allocation3]  }
  0x11   :  { %371 = dma.done.wait [#allocation3], 64  }
  0x12   :  { %372 = vsyncadd [#allocation3], 4294967232  ;;  %vm55_vm0 = vcmask 1041408   ;;  %v376_v0 = vmov 0.0   ;;  %vm56_vm1 = vcmask 1042432   ;;  %v377_v1 = vmov 65535  }
  0x13   :  { %286 = vmatprep.subr.bf16.mxu0 %v376_v0  ;;  %292 = vmatprep.subr.bf16.mxu1 %v376_v0  ;;  %v57_v2 = vsel %vm55_vm0, 4294967295, %v377_v1  ;;  %vm378_vm2 = vmmov 0   ;;  %v43_v4 = vld [vmem:[#allocation2] sm:$0x7]  ;;  %v41_v6 = vld [vmem:[%s477_s0 + $0x8] sm:$0xff]  ;;  %vm51_vm3 = vcmask 39936  }
  0x14   :  { %288 = vmatprep.mubr.msk.bf16.mxu0 %vm378_vm2, %v376_v0  ;;  %296 = vmatprep.mubr.msk.bf16.mxu1 %vm378_vm2, %v376_v0  ;;  %v58_v3 = vsel %vm56_vm1, %v57_v2, 0  ;;  %v40_v5 = vld [vmem:[%s477_s0] sm:$0xff]  ;;  %v316_v10 = vld [vmem:[%s480_s3 + $0x8] sm:$0x7f]   ;;  %vm132_vm4 = vcmask 1046528   ;;  %vm128_vm5 = vcmask 244736  }
  0x15   :  { %v60_v7 = vand.u32 %v58_v3, %v43_v4  ;;  %v42_v8 = vpack.c.bf16 %v41_v6, %v40_v5  ;;  %v315_v9 = vld [vmem:[%s480_s3] sm:$0xff]   ;;  %v134_v11 = vsel %vm132_vm4, %v316_v10, 0  ;;  %v318_v23 = vld [vmem:[%s482_s5 + $0x8] sm:$0x7f]   ;;  %s379_s26 = smov [#allocation5]  }
  0x16   :  { %293 = vmatpush3.bf16.msra.mxu1 %v315_v9  ;;  %v268_v12 = vld [vmem:[%s479_s2] ss:$0 sm:$0xff]  ;;  %v206_v24 = vsel %vm132_vm4, %v318_v23, 0  ;;  %s256_s27 = sshll.u32 %s379_s26, 4  ;;  %s257_s27 = int_to_ptr.vmem [resolvable:$true] %s256_s27 }
  0x17   :  { %287 = vmatpush3.bf16.msra.mxu0 %v60_v7  ;;  %294 = vmatprep.subr.bf16.mxu1 %v376_v0  ;;  %v317_v22 = vld [vmem:[%s482_s5] sm:$0xff]   ;;  %p354_p9 = scmp.lt.s32.totalorder %s257_s27, %s257_s27 }
  0x18   :  { %300 = vmatprep.subr.bf16.mxu0 %v376_v0  ;;  %v270_v25 = vld [vmem:[%s481_s4] ss:$0 sm:$0xff]  ;;  %s349_s4 = scalar_lea.vmem %s257_s27, 256 }
  0x19   :  { %v274_v35 = vld [vmem:[%s483_s6] ss:$0 sm:$0xff]  ;;  %p350_p8 = scmp.ne.s32.totalorder %s257_s27, %s349_s4  ;;  %p355_p10 = scmp.lt.s32.totalorder %s349_s4, %s349_s4 }
  0x1a   :  { %289 = vmatmul.mubr.msk.bf16.vlgmr.msra.gmra.mrb[0].mxu0 %vm51_vm3, %v42_v8  ;;  %295 = vmatpush3.bf16.msra.mxu1 %v134_v11 }
  0x1b   :  { %304 = vmatprep.mubr.msk.bf16.mxu0 %vm378_vm2, %v376_v0  ;;  %301 = vmatpush3.bf16.msra.mxu0 %v317_v22  ;;  %p356_p11 = por %p355_p10, %p354_p9 }
  0x1c   :  { %302 = vmatprep.subr.bf16.mxu0 %v376_v0 }
  0x1d   :  { %p357_p12 = pnand %p356_p11, %p350_p8 }
  0x1f   :  { %303 = vmatpush3.bf16.msra.mxu0 %v206_v24 }
  0xed   :  { %v96_v13 = vpop.f32.mrb[0].mxu0 }
  0xee   :  { %v97_v14 = vadd.f32 %v268_v12, %v96_v13  ;;  %v290_v15 = vpop.f32.mrb[1].mxu0 }
  0xef   :  { %v99_v16 = vpop.f32.mrb[2].mxu0 }
  0xf0   :  { %v100_v17 = vadd.f32 %v268_v12, %v99_v16  ;;  %v291_v18 = vpop.f32.mrb[3].mxu0  ;;  %319 = vtanh.f32 %v97_v14 }
  0xf2   :  { %321 = vtanh.f32 %v100_v17 }
  0xfa   :  { %v320_v19 = vpop.eup %319 }
  0xfc   :  { %v322_v20 = vpop.eup %321 }
  0xfd   :  { %v105_v21 = vpack.c.bf16 %v322_v20, %v320_v19 }
  0xff   :  { %297 = vmatmul.mubr.msk.bf16.vlgmr.msra.gmra.mrb[0].mxu1 %vm128_vm5, %v105_v21 }
 0x1d2   :  { %v170_v26 = vpop.f32.mrb[0].mxu1 }
 0x1d3   :  { %v171_v27 = vadd.f32 %v270_v25, %v170_v26  ;;  %v298_v28 = vpop.f32.mrb[1].mxu1 }
 0x1d4   :  { %v173_v29 = vpop.f32.mrb[2].mxu1 }
 0x1d5   :  { %v174_v30 = vadd.f32 %v270_v25, %v173_v29  ;;  %v299_v31 = vpop.f32.mrb[3].mxu1  ;;  %323 = vtanh.f32 %v171_v27 }
 0x1d7   :  { %325 = vtanh.f32 %v174_v30 }
 0x1df   :  { %v324_v32 = vpop.eup %323 }
 0x1e1   :  { %v326_v33 = vpop.eup %325 }
 0x1e2   :  { %v179_v34 = vpack.c.bf16 %v326_v33, %v324_v32 }
 0x1e4   :  { %305 = vmatmul.mubr.msk.bf16.vlgmr.msra.gmra.mrb[4].mxu0 %vm128_vm5, %v179_v34 }
 0x2b7   :  { %v242_v36 = vpop.f32.mrb[4].mxu0 }
 0x2b8   :  { %v243_v37 = vadd.f32 %v274_v35, %v242_v36  ;;  %v306_v38 = vpop.f32.mrb[5].mxu0 }
 0x2b9   :  { %v245_v39 = vpop.f32.mrb[6].mxu0 }
 0x2ba   :  { %249 = vst [vmem:[#allocation5] sm:$0xff] %v243_v37  ;;  %v246_v40 = vadd.f32 %v274_v35, %v245_v39  ;;  %v307_v41 = vpop.f32.mrb[7].mxu0 }
 0x2bc   :  { %250 = vst [vmem:[#allocation5 + $0x8] sm:$0xff] %v246_v40 }
 0x2bd   :  { %360 = shalt.err (!%p357_p12)
}
 0x2be   :  { %s361_s29 = scalar_lea.hbm %s484_s7, 256 }
 0x2bf   :  { %p362_p13 = scmp.ne.s32.totalorder %s484_s7, %s361_s29  ;;  %p365_p0 = scmp.lt.u32.totalorder %s361_s29, %s484_s7 }
 0x2c1   :  { %p367_p1 = pnand %p365_p0, %p362_p13 }
 0x2c3   :  { %370 = shalt.err (!%p367_p1)
}
 0x2c4   :  { %s380_s11 = smov 128   ;;  %s381_s12 = smov 8  }
 0x2c5   :  { %262 = dma.vmem_to_hbm [thread:$0]  %s257_s27, 256, %s484_s7, [#allocation4], %s380_s11, %s380_s11, %s381_s12  }
 0x2c6   :  { %373 = dma.done.wait [#allocation4], 256  }
 0x2c7   :  { %374 = vsyncadd [#allocation4], 4294967040 }
 0x2c8   :  { %266 = vsyncpa [#allocation3], 1 }
 0x2c9   :  { %267 = vsyncpa [#allocation4], 1 }

</bundles_post_ra>
